<compile_context>
chip_gen: v6e
topology: v6e:2x2x1
jax: 0.10.0
libtpu: 0.0.40
codegen_flags: <defaults>
</compile_context>

<pallas_src>
import jax
import jax.numpy as jnp
from jax.experimental import pallas as pl
from jax.experimental.pallas import tpu as pltpu


def _round_up(x, m):
    return ((x + m - 1) // m) * m


def _pick_tile(dim_pad, cap):
    """Largest multiple of 128 that divides dim_pad and is <= cap.

    dim_pad is always a multiple of 128, so this terminates at >= 128 and the
    chosen tile never inflates the padded dimension.
    """
    t = min(dim_pad, max(cap, 128))
    t -= t % 128
    while dim_pad % t != 0:
        t -= 128
    return t


# ----------------------------- kernels ------------------------------------ #

def _linear_kernel_single_k(x_ref, w_ref, b_ref, o_ref):
    """K fits in one tile: fused matmul + bias, no scratch accumulator."""
    o_ref[...] = (
        jnp.dot(x_ref[...], w_ref[...], preferred_element_type=jnp.float32)
        + b_ref[...]
    ).astype(o_ref.dtype)


def _linear_kernel_multi_k(x_ref, w_ref, b_ref, o_ref, acc_ref):
    """K-last reduction grid; bias folded into the accumulator init."""
    k = pl.program_id(2)

    @pl.when(k == 0)
    def _():
        acc_ref[...] = jnp.broadcast_to(
            b_ref[...].astype(jnp.float32), acc_ref.shape)

    acc_ref[...] += jnp.dot(
        x_ref[...], w_ref[...], preferred_element_type=jnp.float32)

    @pl.when(k == pl.num_programs(2) - 1)
    def _():
        o_ref[...] = acc_ref[...].astype(o_ref.dtype)


# ----------------------------- host wrappers ------------------------------- #

def prepare_linear_prober_params(w, b, *, matmul_dtype=jnp.bfloat16):
    """One-time parameter prep (pad + cast), hoisted out of the forward path.

    w: [input_dim, num_classes]  (transposed vs. torch's [out, in] layout)
    b: [num_classes] or [1, num_classes]
    """
    K, N = w.shape
    K_pad = _round_up(K, 128)
    N_pad = _round_up(N, 128)

    TN = _pick_tile(N_pad, 512)
    if N_pad // TN == 1 and N_pad >= 256:
        # v7x has 2 TensorCores: keep >= 2 blocks on the parallel N axis.
        TN = _pick_tile(N_pad, N_pad // 2)
    TK = _pick_tile(K_pad, 2048)

    w_p = jnp.pad(w.astype(matmul_dtype), ((0, K_pad - K), (0, N_pad - N)))
    b2 = jnp.asarray(b, jnp.float32).reshape(1, -1)
    b_p = jnp.pad(b2, ((0, 0), (0, N_pad - N)))

    return dict(w_p=w_p, b_p=b_p, K=K, N=N, K_pad=K_pad, N_pad=N_pad,
                TK=TK, TN=TN, matmul_dtype=matmul_dtype)


def linear_prober_forward(x, params):
    """LinearProber.forward: logits = x @ w + b.

    x: [B, input_dim] float32 (cast to params['matmul_dtype'] for the MXU)
    params: output of prepare_linear_prober_params (called once, not per step)
    returns: [B, num_classes] float32
    """
    B, K = x.shape
    assert K == params["K"], "weight/input feature mismatch"
    K_pad, N_pad = params["K_pad"], params["N_pad"]
    TK, TN = params["TK"], params["TN"]
    N = params["N"]
    w_p, b_p = params["w_p"], params["b_p"]
    mm_dtype = params["matmul_dtype"]

    # ---- batch tiling (bf16 packs 16 sublanes per vreg; 256 fills the MXU) --
    if B >= 256:
        TM = 256
    elif B >= 128:
        TM = 128
    else:
        TM = _round_up(max(B, 1), 16)
    B_pad = _round_up(B, TM)

    x_p = x.astype(mm_dtype)
    if B_pad != B or K_pad != K:
        x_p = jnp.pad(x_p, ((0, B_pad - B), (0, K_pad - K)))

    mg, ng, kg = B_pad // TM, N_pad // TN, K_pad // TK
    elt = jnp.dtype(mm_dtype).itemsize

    cost = pl.CostEstimate(
        flops=2 * B_pad * K_pad * N_pad,
        transcendentals=0,
        bytes_accessed=(B_pad * K_pad * elt * ng      # x re-read per N block
                        + K_pad * N_pad * elt * mg    # w re-read per M block
                        + N_pad * 4 * mg              # bias
                        + B_pad * N_pad * 4),         # output
    )
    cparams = pltpu.CompilerParams(
        dimension_semantics=(("parallel", "parallel", "arbitrary") if kg > 1
                             else ("parallel", "parallel")),
        vmem_limit_bytes=48 * 1024 * 1024,  # fits v7x's 64 MiB physical VMEM
    )

    if kg == 1:
        # Collapsed K axis: single fused matmul+bias per output tile.
        out = pl.pallas_call(
            _linear_kernel_single_k,
            out_shape=jax.ShapeDtypeStruct((B_pad, N_pad), jnp.float32),
            grid=(mg, ng),
            in_specs=[
                pl.BlockSpec((TM, K_pad), lambda i, j: (i, 0)),
                pl.BlockSpec((K_pad, TN), lambda i, j: (0, j)),
                pl.BlockSpec((1, TN), lambda i, j: (0, j)),
            ],
            out_specs=pl.BlockSpec((TM, TN), lambda i, j: (i, j)),
            compiler_params=cparams,
            cost_estimate=cost,
        )(x_p, w_p, b_p)
    else:
        out = pl.pallas_call(
            _linear_kernel_multi_k,
            out_shape=jax.ShapeDtypeStruct((B_pad, N_pad), jnp.float32),
            grid=(mg, ng, kg),
            in_specs=[
                pl.BlockSpec((TM, TK), lambda i, j, k: (i, k)),
                pl.BlockSpec((TK, TN), lambda i, j, k: (k, j)),
                pl.BlockSpec((1, TN), lambda i, j, k: (0, j)),
            ],
            out_specs=pl.BlockSpec((TM, TN), lambda i, j, k: (i, j)),
            scratch_shapes=[pltpu.VMEM((TM, TN), jnp.float32)],
            compiler_params=cparams,
            cost_estimate=cost,
        )(x_p, w_p, b_p)

    # Slice the zero padding back off (zero pads => exact math).
    return out[:B, :N]


def init_params(key, input_dim, num_classes, dtype=jnp.float32):
    """torch.nn.Linear default init: uniform(+/- 1/sqrt(fan_in))."""
    k1, k2 = jax.random.split(key)
    lim = 1.0 / jnp.sqrt(jnp.array(input_dim, dtype))
    w = jax.random.uniform(k1, (input_dim, num_classes), dtype, -lim, lim)
    b = jax.random.uniform(k2, (num_classes,), dtype, -lim, lim)
    return w, b


if __name__ == "__main__":
    # Small shapes consistent with the module: x is a feature-vector batch.
    B = 2
    input_dim = 32
    num_classes = 4

    key = jax.random.PRNGKey(0)
    kx, kp = jax.random.split(key)

    x = jax.random.normal(kx, (B, input_dim), dtype=jnp.float32)
    w, b = init_params(kp, input_dim, num_classes)

    # One-time parameter preparation (hoisted out of the per-call path).
    params = prepare_linear_prober_params(w, b)

    out = linear_prober_forward(x, params)
    jax.block_until_ready(out)

    # Reference with the same bf16 input quantization and f32 accumulation.
    x_q = x.astype(jnp.bfloat16).astype(jnp.float32)
    w_q = w.astype(jnp.bfloat16).astype(jnp.float32)
    ref = x_q @ w_q + b[None, :]

    assert out.shape == (B, num_classes)
    assert jnp.allclose(out, ref, atol=1e-4, rtol=1e-4)

    print("KERNEL_OK")
</pallas_src>

<mosaic_0001>
module attributes {stable_mosaic.version = 11 : i64} {
  func.func @_linear_kernel_single_k(%arg0: i32, %arg1: i32, %arg2: memref<16x128xbf16, #tpu.memory_space<vmem>>, %arg3: memref<128x128xbf16, #tpu.memory_space<vmem>>, %arg4: memref<1x128xf32, #tpu.memory_space<vmem>>, %arg5: memref<16x128xf32, #tpu.memory_space<vmem>>) attributes {dimension_semantics = [#tpu.dimension_semantics<parallel>, #tpu.dimension_semantics<parallel>], iteration_bounds = array<i64: 1, 1>, scalar_prefetch = 0 : i64, scratch_operands = 0 : i64, tpu.core_type = #tpu.core_type<tc>, window_params = [{transform_indices = @transform_0, window_bounds = array<i64: 16, 128>}, {transform_indices = @transform_1, window_bounds = array<i64: 128, 128>}, {transform_indices = @transform_2, window_bounds = array<i64: 1, 128>}, {transform_indices = @transform_3, window_bounds = array<i64: 16, 128>}]} {
    %c0 = arith.constant 0 : index
    %c0_0 = arith.constant 0 : index
    %0 = vector.load %arg2[%c0, %c0_0] : memref<16x128xbf16, #tpu.memory_space<vmem>>, vector<16x128xbf16>
    %c0_1 = arith.constant 0 : index
    %c0_2 = arith.constant 0 : index
    %1 = vector.load %arg3[%c0_1, %c0_2] : memref<128x128xbf16, #tpu.memory_space<vmem>>, vector<128x128xbf16>
    %cst = arith.constant dense<0.000000e+00> : vector<16x128xf32>
    %2 = tpu.matmul %0, %1, %cst {dimension_numbers = #tpu.dot_dimension_numbers<[1], [0], [0], [1], [0, 0, 1, 1], [], []>} : vector<16x128xbf16>, vector<128x128xbf16>, vector<16x128xf32> -> vector<16x128xf32>
    %c0_3 = arith.constant 0 : index
    %c0_4 = arith.constant 0 : index
    %3 = vector.load %arg4[%c0_3, %c0_4] : memref<1x128xf32, #tpu.memory_space<vmem>>, vector<1x128xf32>
    %4 = vector.broadcast %3 : vector<1x128xf32> to vector<16x128xf32>
    %5 = arith.addf %2, %4 : vector<16x128xf32>
    %c0_5 = arith.constant 0 : index
    %c0_6 = arith.constant 0 : index
    %6 = vector.load %arg5[%c0_5, %c0_6] : memref<16x128xf32, #tpu.memory_space<vmem>>, vector<16x128xf32>
    tpu.vector_store %arg5[%c0_5, %c0_6], %5 {strides = array<i32>} : memref<16x128xf32, #tpu.memory_space<vmem>>, vector<16x128xf32>,
    return
  }
  func.func @transform_0(%arg0: i32, %arg1: i32) -> (i32, i32) {
    %c0_i32 = arith.constant 0 : i32
    %c0_i32_0 = arith.constant 0 : i32
    return %arg0, %c0_i32 : i32, i32
  }
  func.func @transform_1(%arg0: i32, %arg1: i32) -> (i32, i32) {
    %c0_i32 = arith.constant 0 : i32
    %c0_i32_0 = arith.constant 0 : i32
    return %c0_i32, %arg1 : i32, i32
  }
  func.func @transform_2(%arg0: i32, %arg1: i32) -> (i32, i32) {
    %c0_i32 = arith.constant 0 : i32
    %c0_i32_0 = arith.constant 0 : i32
    return %c0_i32, %arg1 : i32, i32
  }
  func.func @transform_3(%arg0: i32, %arg1: i32) -> (i32, i32) {
    %c0_i32 = arith.constant 0 : i32
    return %arg0, %arg1 : i32, i32
  }
}

</mosaic_0001>

<bundles_post_ra>
// kernel: tpu_custom_call.1
= control target key start
LH: loop header
LB: loop body
LE: loop exit
PB: predicated region body
PF: predicated region fallthrough
CT: control target
= control target key end

     0   :  { %8 = vsyncpa [#allocation3], 0  ;;  %s348_s0 = inlined_call_operand.hbm [shape: bf16[16,128], index: 0, kind: input, shape index: {}]   ;;  %s349_s1 = inlined_call_operand.hbm [shape: bf16[128,128], index: 1, kind: input, shape index: {}]   ;;  %s350_s2 = inlined_call_operand.vmem [shape: f32[1,128], index: 2, kind: input, shape index: {}]   ;;  %s351_s3 = inlined_call_operand.hbm [shape: f32[16,128], index: 3, kind: output, shape index: {}]  }
   0x1   :  { %9 = vsyncpa [#allocation6], 0 }
   0x2   :  { %10 = vsyncpa [#allocation4], 0  ;;  %s307_s12 = smov [#allocation2]  }
   0x3   :  { %s16_s13 = sshll.u32 %s307_s12, 4  ;;  %s17_s13 = int_to_ptr.vmem [resolvable:$true] %s16_s13 }
   0x4   :  { %s249_s14 = scalar_lea.vmem %s17_s13, 128  ;;  %p254_p1 = scmp.lt.s32.totalorder %s17_s13, %s17_s13 }
   0x5   :  { %p250_p0 = scmp.ne.s32.totalorder %s17_s13, %s249_s14  ;;  %p255_p2 = scmp.lt.s32.totalorder %s249_s14, %s249_s14 }
   0x7   :  { %p256_p3 = por %p255_p2, %p254_p1 }
   0x9   :  { %p257_p4 = pnand %p256_p3, %p250_p0 }
   0xb   :  { %260 = shalt.err (!%p257_p4)
}
   0xc   :  { %s308_s15 = smov 64   ;;  %s309_s16 = smov 4  }
   0xd   :  { %22 = dma.hbm_to_vmem [thread:$0]  %s348_s0, 128, %s17_s13, [#allocation3], %s308_s15, %s308_s15, %s309_s16  }
   0xe   :  { %s310_s19 = smov [#allocation5]  }
   0xf   :  { %s28_s20 = sshll.u32 %s310_s19, 4  ;;  %s29_s20 = int_to_ptr.vmem [resolvable:$true] %s28_s20 }
  0x10   :  { %s269_s21 = scalar_lea.vmem %s29_s20, 1024  ;;  %p274_p6 = scmp.lt.s32.totalorder %s29_s20, %s29_s20 }
  0x11   :  { %p270_p5 = scmp.ne.s32.totalorder %s29_s20, %s269_s21  ;;  %p275_p7 = scmp.lt.s32.totalorder %s269_s21, %s269_s21 }
  0x13   :  { %p276_p8 = por %p275_p7, %p274_p6 }
  0x15   :  { %p277_p9 = pnand %p276_p8, %p270_p5 }
  0x17   :  { %280 = shalt.err (!%p277_p9)
}
  0x18   :  { %34 = dma.hbm_to_vmem [thread:$0]  %s349_s1, 1024, %s29_s20, [#allocation6], %s308_s15, %s308_s15, %s309_s16  }
  0x19   :  { %301 = dma.done.wait [#allocation3], 128  }
  0x1a   :  { %302 = vsyncadd [#allocation3], 4294967168 }
  0x1b   :  { %303 = dma.done.wait [#allocation6], 1024  }
  0x1c   :  { %304 = vsyncadd [#allocation6], 4294966272  ;;  %v311_v0 = vmov 0.0   ;;  %vm312_vm0 = vmmov 0   ;;  %v232_v1 = vld [vmem:[#allocation5 + $0x38] sm:$0xff]   ;;  %v233_v2 = vld [vmem:[#allocation5 + $0x30] sm:$0xff]  }
  0x1d   :  { %203 = vmatprep.subr.bf16.mxu0 %v311_v0  ;;  %219 = vmatprep.mubr.msk.bf16.mxu0 %vm312_vm0, %v311_v0  ;;  %v234_v3 = vld [vmem:[#allocation5 + $0x28] sm:$0xff]   ;;  %v235_v4 = vld [vmem:[#allocation5 + $0x20] sm:$0xff]   ;;  %v236_v5 = vld [vmem:[#allocation5 + $0x18] sm:$0xff]   ;;  %s313_s24 = smov [#allocation7]  }
  0x1e   :  { %204 = vmatpush3.bf16.msra.mxu0 %v232_v1  ;;  %v237_v6 = vld [vmem:[#allocation5 + $0x10] sm:$0xff]   ;;  %v238_v7 = vld [vmem:[#allocation5 + $0x8] sm:$0xff]   ;;  %v239_v8 = vld [vmem:[#allocation5] sm:$0xff]   ;;  %s171_s25 = sshll.u32 %s313_s24, 4  ;;  %s172_s25 = int_to_ptr.vmem [resolvable:$true] %s171_s25 }
  0x1f   :  { %205 = vmatprep.subr.bf16.mxu0 %v311_v0  ;;  %v240_v9 = vld [vmem:[#allocation2] sm:$0xff]   ;;  %s281_s26 = scalar_lea.vmem %s172_s25, 256  ;;  %p286_p11 = scmp.lt.s32.totalorder %s172_s25, %s172_s25 }
  0x20   :  { %v184_v10 = vld [vmem:[%s350_s2] ss:$0 sm:$0xff]  ;;  %p282_p10 = scmp.ne.s32.totalorder %s172_s25, %s281_s26  ;;  %p287_p12 = scmp.lt.s32.totalorder %s281_s26, %s281_s26 }
  0x22   :  { %206 = vmatpush3.bf16.msra.mxu0 %v233_v2  ;;  %p288_p13 = por %p287_p12, %p286_p11 }
  0x23   :  { %207 = vmatprep.subr.bf16.mxu0 %v311_v0 }
  0x24   :  { %p289_p0 = pnand %p288_p13, %p282_p10 }
  0x26   :  { %208 = vmatpush3.bf16.msra.mxu0 %v234_v3 }
  0x27   :  { %209 = vmatprep.subr.bf16.mxu0 %v311_v0 }
  0x2a   :  { %210 = vmatpush3.bf16.msra.mxu0 %v235_v4 }
  0x2b   :  { %211 = vmatprep.subr.bf16.mxu0 %v311_v0 }
  0x2e   :  { %212 = vmatpush3.bf16.msra.mxu0 %v236_v5 }
  0x2f   :  { %213 = vmatprep.subr.bf16.mxu0 %v311_v0 }
  0x32   :  { %214 = vmatpush3.bf16.msra.mxu0 %v237_v6 }
  0x33   :  { %215 = vmatprep.subr.bf16.mxu0 %v311_v0 }
  0x36   :  { %216 = vmatpush3.bf16.msra.mxu0 %v238_v7 }
  0x37   :  { %217 = vmatprep.subr.bf16.mxu0 %v311_v0 }
  0x3a   :  { %218 = vmatpush3.bf16.msra.mxu0 %v239_v8 }
  0x3d   :  { %220 = vmatmul.mubr.bf16.vlgmr.msra.gmra.mxu0 %v240_v9 }
  0xfd   :  { %v157_v11 = vpop.f32.mrf.mxu0 }
  0xfe   :  { %v158_v12 = vadd.f32 %v184_v10, %v157_v11 }
  0xff   :  { %v221_v13 = vpop.f32.mrf.mxu0 }
 0x100   :  { %164 = vst [vmem:[#allocation7] sm:$0xff] %v158_v12 }
 0x101   :  { %v160_v14 = vpop.f32.mrf.mxu0 }
 0x102   :  { %v161_v15 = vadd.f32 %v184_v10, %v160_v14 }
 0x103   :  { %v222_v16 = vpop.f32.mrf.mxu0 }
 0x104   :  { %165 = vst [vmem:[#allocation7 + $0x8] sm:$0xff] %v161_v15 }
 0x105   :  { %292 = shalt.err (!%p289_p0)
}
 0x106   :  { %s314_s27 = smov 128   ;;  %s315_s2 = smov 8  }
 0x107   :  { %177 = dma.vmem_to_hbm [thread:$0]  %s172_s25, 256, %s351_s3, [#allocation4], %s314_s27, %s314_s27, %s315_s2  }
 0x108   :  { %305 = dma.done.wait [#allocation4], 256  }
 0x109   :  { %306 = vsyncadd [#allocation4], 4294967040 }
 0x10a   :  { %181 = vsyncpa [#allocation3], 1 }
 0x10b   :  { %182 = vsyncpa [#allocation6], 1 }
 0x10c   :  { %183 = vsyncpa [#allocation4], 1 }

</bundles_post_ra>
